<compile_context>
chip_gen: v7x
topology: tpu7x:2x2x1
jax: 0.10.0
libtpu: 0.0.40
codegen_flags: <defaults>
</compile_context>

<pallas_src>
import functools
import math

import jax
import jax.numpy as jnp
from jax.experimental import pallas as pl
from jax.experimental.pallas import tpu as pltpu


GAMMA = 1.0
CLASS_WEIGHTS = (1.0, 1.0, 1.0)


def _focal_loss_kernel(pred_ref, label_ref, out_ref, *, gamma, class_weights):
    pred = pred_ref[...].astype(jnp.float32)     # (tile, LANE)
    label = label_ref[...].astype(jnp.float32)   # (tile, LANE)

    prob = jax.nn.sigmoid(pred)
    label_prob = jnp.clip(label * prob + (1.0 - label) * (1.0 - prob),
                          1e-07, 0.999999)
    bce = -jnp.log(label_prob)
    one_minus = 1.0 - label_prob

    # Trace-time specialization of the focusing term (avoids exp(g*log(x))).
    if gamma == 0.0:
        focal = bce
    elif gamma == 1.0:
        focal = one_minus * bce
    elif gamma == 2.0:
        focal = one_minus * one_minus * bce
    else:
        focal = jnp.power(one_minus, gamma) * bce

    # Per-class weights: lane position l corresponds to channel l % C because
    # LANE % C == 0.  Built in-kernel from a lane iota -> no weight DMA stream.
    if all(w == class_weights[0] for w in class_weights):
        w0 = float(class_weights[0])
        if w0 == 1.0:
            weighted = focal                      # weights == 1 everywhere
        else:
            weights = label * w0 + (1.0 - label)
            weighted = weights * focal
    else:
        c = len(class_weights)
        lane = pred.shape[-1]
        ch = jax.lax.broadcasted_iota(jnp.int32, (1, lane), 1) % c
        w = jnp.full((1, lane), float(class_weights[-1]), dtype=jnp.float32)
        for idx in range(c - 2, -1, -1):
            w = jnp.where(ch == idx, float(class_weights[idx]), w)
        weights = label * w + (1.0 - label)       # (1, LANE) broadcasts over rows
        weighted = weights * focal

    out_ref[...] = weighted.astype(out_ref.dtype)


def focal_loss(pred, label, *, gamma=GAMMA, class_weights=CLASS_WEIGHTS,
               row_tile=1024):
    """Elementwise focal loss.  pred/label: (..., C) with C == len(class_weights)."""
    assert pred.shape == label.shape
    orig_shape = pred.shape
    c = orig_shape[-1]
    assert c == len(class_weights)
    out_dtype = pred.dtype

    # Lane-dense width: multiple of both C (channel pattern repeats cleanly)
    # and 128 (full-lane, unmasked vregs/stores).  For C=3 this is 384.
    lane_width = (c * 128) // math.gcd(c, 128)

    total = int(pred.size)
    rows_needed = pl.cdiv(total, lane_width)
    # Shrink the row tile for tiny inputs (keep it a multiple of 8 sublanes).
    row_tile = max(8, min(row_tile, pl.cdiv(rows_needed, 8) * 8))
    n_rows = pl.cdiv(rows_needed, row_tile) * row_tile
    padded_total = n_rows * lane_width
    pad = padded_total - total

    pred_flat = pred.reshape(-1)
    label_flat = label.reshape(-1)
    if pad:
        pred_flat = jnp.pad(pred_flat, (0, pad))
        label_flat = jnp.pad(label_flat, (0, pad))

    pred2d = pred_flat.reshape(n_rows, lane_width)
    label2d = label_flat.reshape(n_rows, lane_width)

    kernel = functools.partial(
        _focal_loss_kernel,
        gamma=float(gamma),
        class_weights=tuple(float(w) for w in class_weights),
    )

    out2d = pl.pallas_call(
        kernel,
        out_shape=jax.ShapeDtypeStruct((n_rows, lane_width), out_dtype),
        grid_spec=pltpu.PrefetchScalarGridSpec(
            num_scalar_prefetch=0,
            grid=(n_rows // row_tile,),
            in_specs=[
                pl.BlockSpec((row_tile, lane_width), lambda i: (i, 0)),
                pl.BlockSpec((row_tile, lane_width), lambda i: (i, 0)),
            ],
            out_specs=pl.BlockSpec((row_tile, lane_width), lambda i: (i, 0)),
        ),
        compiler_params=pltpu.CompilerParams(
            dimension_semantics=("parallel",)),
    )(pred2d, label2d)

    out_flat = out2d.reshape(-1)
    if pad:
        out_flat = out_flat[:total]
    return out_flat.reshape(orig_shape)


def _reference(pred, label, gamma, class_weights):
    pred = pred.astype(jnp.float32)
    label = label.astype(jnp.float32)
    prob = jax.nn.sigmoid(pred)
    label_prob = jnp.clip(label * prob + (1 - label) * (1 - prob),
                          1e-07, 0.999999)
    bce = -jnp.log(label_prob)
    focal = jnp.power(1 - label_prob, gamma) * bce
    w = jnp.asarray(class_weights, dtype=jnp.float32)
    weights = label * w + (1 - label)
    return weights * focal


if __name__ == "__main__":
    key = jax.random.PRNGKey(0)
    k_pred, k_label = jax.random.split(key)

    B, H, W, C = 2, 16, 16, 3            # small NHWC example, C matches weights
    pred = jax.random.normal(k_pred, (B, H, W, C), dtype=jnp.float32)
    label = jax.random.bernoulli(k_label, 0.5, (B, H, W, C)).astype(jnp.float32)

    cases = [
        (1.0, (1.0, 1.0, 1.0)),          # default (fast path: no power, no weights)
        (2.0, (0.5, 2.0, 1.0)),          # squared focusing + per-class weights
        (1.5, (3.0, 3.0, 3.0)),          # generic power path + uniform non-1 weight
    ]
    for gamma, weights in cases:
        out = focal_loss(pred, label, gamma=gamma, class_weights=weights)
        out = jax.block_until_ready(out)
        ref = _reference(pred, label, gamma, weights)
        assert out.shape == (B, H, W, C)
        assert jnp.allclose(out, ref, atol=1e-5, rtol=1e-5), (gamma, weights)

    print("KERNEL_OK")
</pallas_src>

<mosaic_0001>
module attributes {stable_mosaic.version = 11 : i64} {
  func.func @_focal_loss_kernel(%arg0: i32, %arg1: memref<8x384xf32, #tpu.memory_space<vmem>>, %arg2: memref<8x384xf32, #tpu.memory_space<vmem>>, %arg3: memref<8x384xf32, #tpu.memory_space<vmem>>) attributes {dimension_semantics = [#tpu.dimension_semantics<parallel>], iteration_bounds = array<i64: 1>, scalar_prefetch = 0 : i64, scratch_operands = 0 : i64, tpu.core_type = #tpu.core_type<tc>, window_params = [{transform_indices = @transform_0, window_bounds = array<i64: 8, 384>}, {transform_indices = @transform_1, window_bounds = array<i64: 8, 384>}, {transform_indices = @transform_2, window_bounds = array<i64: 8, 384>}]} {
    %c0 = arith.constant 0 : index
    %c0_0 = arith.constant 0 : index
    %0 = vector.load %arg1[%c0, %c0_0] : memref<8x384xf32, #tpu.memory_space<vmem>>, vector<8x384xf32>
    %c0_1 = arith.constant 0 : index
    %c0_2 = arith.constant 0 : index
    %1 = vector.load %arg2[%c0_1, %c0_2] : memref<8x384xf32, #tpu.memory_space<vmem>>, vector<8x384xf32>
    %2 = arith.negf %0 : vector<8x384xf32>
    %3 = math.exp %2 : vector<8x384xf32>
    %cst = arith.constant 1.000000e+00 : f32
    %4 = vector.broadcast %cst : f32 to vector<8x384xf32>
    %5 = arith.addf %4, %3 : vector<8x384xf32>
    %6 = arith.divf %4, %5 : vector<8x384xf32>
    %7 = arith.mulf %1, %6 : vector<8x384xf32>
    %cst_3 = arith.constant 1.000000e+00 : f32
    %8 = vector.broadcast %cst_3 : f32 to vector<8x384xf32>
    %9 = arith.subf %8, %1 : vector<8x384xf32>
    %cst_4 = arith.constant 1.000000e+00 : f32
    %10 = vector.broadcast %cst_4 : f32 to vector<8x384xf32>
    %11 = arith.subf %10, %6 : vector<8x384xf32>
    %12 = arith.mulf %9, %11 : vector<8x384xf32>
    %13 = arith.addf %7, %12 : vector<8x384xf32>
    %cst_5 = arith.constant 1.000000e-07 : f32
    %cst_6 = arith.constant 0.999998986 : f32
    %14 = vector.broadcast %cst_5 : f32 to vector<8x384xf32>
    %15 = arith.maximumf %14, %13 : vector<8x384xf32>
    %16 = vector.broadcast %cst_6 : f32 to vector<8x384xf32>
    %17 = arith.minimumf %16, %15 : vector<8x384xf32>
    %18 = math.log %17 : vector<8x384xf32>
    %cst_7 = arith.constant 0.000000e+00 : f32
    %19 = vector.broadcast %cst_7 : f32 to vector<8x384xf32>
    %20 = arith.subf %19, %18 : vector<8x384xf32>
    %cst_8 = arith.constant 1.000000e+00 : f32
    %21 = vector.broadcast %cst_8 : f32 to vector<8x384xf32>
    %22 = arith.subf %21, %17 : vector<8x384xf32>
    %23 = arith.mulf %22, %20 : vector<8x384xf32>
    %c0_9 = arith.constant 0 : index
    %c0_10 = arith.constant 0 : index
    %24 = vector.load %arg3[%c0_9, %c0_10] : memref<8x384xf32, #tpu.memory_space<vmem>>, vector<8x384xf32>
    tpu.vector_store %arg3[%c0_9, %c0_10], %23 {strides = array<i32>} : memref<8x384xf32, #tpu.memory_space<vmem>>, vector<8x384xf32>,
    return
  }
  func.func @transform_0(%arg0: i32) -> (i32, i32) {
    %c0_i32 = arith.constant 0 : i32
    %c0_i32_0 = arith.constant 0 : i32
    return %arg0, %c0_i32 : i32, i32
  }
  func.func @transform_1(%arg0: i32) -> (i32, i32) {
    %c0_i32 = arith.constant 0 : i32
    %c0_i32_0 = arith.constant 0 : i32
    return %arg0, %c0_i32 : i32, i32
  }
  func.func @transform_2(%arg0: i32) -> (i32, i32) {
    %c0_i32 = arith.constant 0 : i32
    %c0_i32_0 = arith.constant 0 : i32
    return %arg0, %c0_i32 : i32, i32
  }
}

</mosaic_0001>

<bundles_post_ra>
// kernel: tpu_custom_call.1
= control target key start
LH: loop header
LB: loop body
LE: loop exit
PB: predicated region body
PF: predicated region fallthrough
CT: control target
= control target key end

     0   :  { %7 = vsyncpa [#allocation3], 0  ;;  %s265_s0 = inlined_call_operand.hbm [shape: f32[8,384], index: 0, kind: input, shape index: {}]   ;;  %s266_s1 = inlined_call_operand.hbm [shape: f32[8,384], index: 1, kind: input, shape index: {}]   ;;  %s267_s2 = inlined_call_operand.hbm [shape: f32[8,384], index: 2, kind: output, shape index: {}]  }
   0x1   :  { %8 = vsyncpa [#allocation6], 0 }
   0x2   :  { %9 = vsyncpa [#allocation4], 0  ;;  %s211_s9 = smov [#allocation2]   ;;  %s212_s11 = smov [#allocation5]  }
   0x3   :  { %s16_s10 = sshll.u32 %s211_s9, 4  ;;  %s26_s12 = sshll.u32 %s212_s11, 4  ;;  %s17_s10 = int_to_ptr.vmem [resolvable:$true] %s16_s10  ;;  %s27_s12 = int_to_ptr.vmem [resolvable:$true] %s26_s12 }
   0x4   :  { %s139_s15 = scalar_lea.hbm %s265_s0, 384 }
   0x5   :  { %p140_p0 = scmp.ne.s32.totalorder %s265_s0, %s139_s15  ;;  %p143_p1 = scmp.lt.u32.totalorder %s139_s15, %s265_s0 }
   0x7   :  { %p145_p2 = pnand %p143_p1, %p140_p0 }
   0x9   :  { %148 = shalt.err (!%p145_p2)
}
   0xa   :  { %s149_s20 = scalar_lea.vmem %s17_s10, 384  ;;  %p154_p4 = scmp.lt.s32.totalorder %s17_s10, %s17_s10 }
   0xb   :  { %p150_p3 = scmp.ne.s32.totalorder %s17_s10, %s149_s20  ;;  %p155_p5 = scmp.lt.s32.totalorder %s149_s20, %s149_s20 }
   0xd   :  { %p156_p6 = por %p155_p5, %p154_p4 }
   0xf   :  { %p157_p7 = pnand %p156_p6, %p150_p3 }
  0x11   :  { %160 = shalt.err (!%p157_p7)
}
  0x12   :  { %19 = dma.hbm_to_vmem [thread:$0]  %s265_s0, 384, %s17_s10, [#allocation3]  }
  0x13   :  { %s161_s25 = scalar_lea.hbm %s266_s1, 384 }
  0x14   :  { %p162_p8 = scmp.ne.s32.totalorder %s266_s1, %s161_s25  ;;  %p165_p9 = scmp.lt.u32.totalorder %s161_s25, %s266_s1 }
  0x16   :  { %p167_p10 = pnand %p165_p9, %p162_p8 }
  0x18   :  { %170 = shalt.err (!%p167_p10)
}
  0x19   :  { %s171_s30 = scalar_lea.vmem %s27_s12, 384  ;;  %p176_p12 = scmp.lt.s32.totalorder %s27_s12, %s27_s12 }
  0x1a   :  { %p172_p11 = scmp.ne.s32.totalorder %s27_s12, %s171_s30  ;;  %p177_p13 = scmp.lt.s32.totalorder %s171_s30, %s171_s30 }
  0x1c   :  { %p178_p0 = por %p177_p13, %p176_p12 }
  0x1e   :  { %p179_p1 = pnand %p178_p0, %p172_p11 }
  0x20   :  { %182 = shalt.err (!%p179_p1)
}
  0x21   :  { %29 = dma.hbm_to_vmem [thread:$0]  %s266_s1, 384, %s27_s12, [#allocation6]  }
  0x22   :  { %205 = dma.done.wait [#allocation3], 384  }
  0x23   :  { %206 = vsyncadd [#allocation3], 4294966912 }
  0x24   :  { %207 = dma.done.wait [#allocation6], 384  }
  0x25   :  { %208 = vsyncadd [#allocation6], 4294966912  ;;  %v36_v0 = vld [vmem:[#allocation2] sm:$0xff]  ;;  %v37_v1 = vld [vmem:[#allocation2 + $0x8] sm:$0xff]  ;;  %s213_s1 = smov [#allocation7]  }
  0x26   :  { %v115_v2 = vmul.f32 -1.442695, %v36_v0  ;;  %v116_v3 = vmul.f32 -1.442695, %v37_v1  ;;  %v38_v4 = vld [vmem:[#allocation2 + $0x10] sm:$0xff]  ;;  %v39_v12 = vld [vmem:[#allocation5] sm:$0xff] }
  0x27   :  { %v117_v5 = vmul.f32 -1.442695, %v38_v4  ;;  %v40_v13 = vld [vmem:[#allocation5 + $0x8] sm:$0xff]  ;;  %v41_v14 = vld [vmem:[#allocation5 + $0x10] sm:$0xff]  ;;  %v63_v15 = vsub.f32 1.0, %v39_v12  ;;  %s105_s4 = sshll.u32 %s213_s1, 4  ;;  %s106_s4 = int_to_ptr.vmem [resolvable:$true] %s105_s4 }
  0x28   :  { %121 = vpow2.f32 %v115_v2  ;;  %v64_v17 = vsub.f32 1.0, %v40_v13  ;;  %v65_v21 = vsub.f32 1.0, %v41_v14  ;;  %s183_s5 = scalar_lea.vmem %s106_s4, 384  ;;  %p188_p3 = scmp.lt.s32.totalorder %s106_s4, %s106_s4 }
  0x29   :  { %123 = vpow2.f32 %v116_v3  ;;  %p184_p2 = scmp.ne.s32.totalorder %s106_s4, %s183_s5  ;;  %p189_p4 = scmp.lt.s32.totalorder %s183_s5, %s183_s5 }
  0x2a   :  { %125 = vpow2.f32 %v117_v5 }
  0x2b   :  { %p190_p5 = por %p189_p4, %p188_p3 }
  0x2d   :  { %p191_p6 = pnand %p190_p5, %p184_p2 }
  0x32   :  { %v122_v6 = vpop.eup %121 }
  0x33   :  { %v124_v7 = vpop.eup %123  ;;  %v51_v8 = vadd.f32 1.0, %v122_v6 }
  0x34   :  { %v126_v9 = vpop.eup %125  ;;  %v52_v10 = vadd.f32 1.0, %v124_v7 }
  0x35   :  { %127 = vrcp.f32 %v51_v8  ;;  %v53_v11 = vadd.f32 1.0, %v126_v9 }
  0x36   :  { %129 = vrcp.f32 %v52_v10 }
  0x37   :  { %131 = vrcp.f32 %v53_v11 }
  0x3f   :  { %v128_v16 = vpop.eup %127 }
  0x40   :  { %v130_v18 = vpop.eup %129  ;;  %v60_v19 = vmul.f32 %v128_v16, %v39_v12  ;;  %v66_v20 = vsub.f32 1.0, %v128_v16 }
  0x41   :  { %v132_v22 = vpop.eup %131  ;;  %v61_v23 = vmul.f32 %v130_v18, %v40_v13  ;;  %v67_v24 = vsub.f32 1.0, %v130_v18 }
  0x42   :  { %v69_v25 = vmul.f32 %v66_v20, %v63_v15  ;;  %v62_v26 = vmul.f32 %v132_v22, %v41_v14  ;;  %v68_v27 = vsub.f32 1.0, %v132_v22 }
  0x43   :  { %v70_v28 = vmul.f32 %v67_v24, %v64_v17 }
  0x44   :  { %v72_v29 = vadd.f32 %v69_v25, %v60_v19  ;;  %v71_v30 = vmul.f32 %v68_v27, %v65_v21 }
  0x45   :  { %v73_v31 = vadd.f32 %v70_v28, %v61_v23 }
  0x46   :  { %v75_v32 = vmax.f32 %v72_v29, 1e-07  ;;  %v74_v33 = vadd.f32 %v71_v30, %v62_v26 }
  0x47   :  { %v76_v34 = vmax.f32 %v73_v31, 1e-07 }
  0x48   :  { %v78_v35 = vmin.f32 %v75_v32, 0.999999  ;;  %v77_v36 = vmax.f32 %v74_v33, 1e-07 }
  0x49   :  { %v79_v37 = vmin.f32 %v76_v34, 0.999999 }
  0x4a   :  { %133 = vlog2.f32 %v78_v35  ;;  %v80_v38 = vmin.f32 %v77_v36, 0.999999  ;;  %v90_v42 = vsub.f32 1.0, %v78_v35 }
  0x4b   :  { %135 = vlog2.f32 %v79_v37  ;;  %v91_v45 = vsub.f32 1.0, %v79_v37 }
  0x4c   :  { %137 = vlog2.f32 %v80_v38  ;;  %v92_v48 = vsub.f32 1.0, %v80_v38 }
  0x54   :  { %v134_v39 = vpop.eup %133 }
  0x55   :  { %v136_v40 = vpop.eup %135  ;;  %v82_v41 = vmul.f32 0.6931472, %v134_v39 }
  0x56   :  { %v138_v43 = vpop.eup %137  ;;  %v84_v44 = vmul.f32 0.6931472, %v136_v40 }
  0x57   :  { %v87_v46 = vsub.f32 0.0, %v82_v41  ;;  %v86_v47 = vmul.f32 0.6931472, %v138_v43 }
  0x58   :  { %v88_v49 = vsub.f32 0.0, %v84_v44 }
  0x59   :  { %v93_v50 = vmul.f32 %v90_v42, %v87_v46  ;;  %v89_v51 = vsub.f32 0.0, %v86_v47 }
  0x5a   :  { %v94_v52 = vmul.f32 %v91_v45, %v88_v49 }
  0x5b   :  { %96 = vst [vmem:[#allocation7] sm:$0xff] %v93_v50  ;;  %v95_v53 = vmul.f32 %v92_v48, %v89_v51 }
  0x5c   :  { %97 = vst [vmem:[#allocation7 + $0x8] sm:$0xff] %v94_v52 }
  0x5d   :  { %98 = vst [vmem:[#allocation7 + $0x10] sm:$0xff] %v95_v53 }
  0x5e   :  { %194 = shalt.err (!%p191_p6)
}
  0x5f   :  { %s195_s8 = scalar_lea.hbm %s267_s2, 384 }
  0x60   :  { %p196_p7 = scmp.ne.s32.totalorder %s267_s2, %s195_s8  ;;  %p199_p8 = scmp.lt.u32.totalorder %s195_s8, %s267_s2 }
  0x62   :  { %p201_p9 = pnand %p199_p8, %p196_p7 }
  0x64   :  { %204 = shalt.err (!%p201_p9)
}
  0x65   :  { %108 = dma.vmem_to_hbm [thread:$0]  %s106_s4, 384, %s267_s2, [#allocation4]  }
  0x66   :  { %209 = dma.done.wait [#allocation4], 384  }
  0x67   :  { %210 = vsyncadd [#allocation4], 4294966912 }
  0x68   :  { %112 = vsyncpa [#allocation3], 1 }
  0x69   :  { %113 = vsyncpa [#allocation6], 1 }
  0x6a   :  { %114 = vsyncpa [#allocation4], 1 }

</bundles_post_ra>
